<compile_context>
chip_gen: v7x
topology: tpu7x:2x2x1
jax: 0.10.0
libtpu: 0.0.40
codegen_flags: <defaults>
</compile_context>

<pallas_src>
import functools

import jax
import jax.numpy as jnp
from jax import lax
from jax.experimental import pallas as pl
from jax.experimental.pallas import tpu as pltpu


def _gat_kernel(x_ref, adj_ref, w_ref, b_ref, ar_ref, wal_ref, bal_ref,
                o_ref, f_s, right_s, out_acc,
                *, num_heads, c_head, alpha, tile_i, use_bf16_exp):
    """Grid = (batch, row_tile); row-tile axis is innermost ("arbitrary")."""
    i_tile = pl.program_id(1)

    # ---- Once per batch element: projection + per-head right scores. --------
    @pl.when(i_tile == 0)
    def _():
        x = x_ref[0]                                               # (N, c_in) f32
        proj = jnp.dot(x, w_ref[...],
                       preferred_element_type=jnp.float32) + b_ref[...]   # (N, hc)
        # right_s[h, j] = proj[j, head h] . a_r[h]  — one MXU op for all heads,
        # produced directly in (H, N) layout so per-head rows broadcast over j.
        right_s[...] = lax.dot_general(ar_ref[...], proj,
                                       (((1,), (1,)), ((), ())),
                                       preferred_element_type=jnp.float32)  # (H, N)
        # Lane-dense bf16 projection, used as V and sliced per head statically.
        f_s[...] = proj.astype(jnp.bfloat16)                       # (N, hc)

    # ---- Every (batch, row tile): mask + per-head softmax + probs @ V. ------
    # Hoisted edge mask (replacement semantics, like the PyTorch module).
    edge = adj_ref[0].astype(jnp.float32) == 1.0                   # (tile_i, N) bool
    neg_big = jnp.float32(-9e15)

    i0 = pl.multiple_of(i_tile * tile_i, tile_i)
    x_tile = x_ref[0, pl.ds(i0, tile_i), :]                        # (tile_i, c_in) f32
    # Exact-f32 left scores for this row tile:  x_tile @ (W^T a_l) + (b . a_l).
    # (Tiny matmul; removes the lane-padded (N, H) f32 left-score scratch.)
    l_blk = jnp.dot(x_tile, wal_ref[...],
                    preferred_element_type=jnp.float32) + bal_ref[...]     # (tile_i, H)

    # Static head loop; each head's dataflow terminates in a VMEM store into
    # out_acc, bounding vreg live ranges across heads without dynamic lane
    # indexing.  The output tile is then written with ONE dense store.
    for h in range(num_heads):
        logits = l_blk[:, h:h + 1] + right_s[pl.ds(h, 1), :]       # (tile_i, N)
        logits = jnp.where(logits >= 0, logits, alpha * logits)    # LeakyReLU
        masked = jnp.where(edge, logits, neg_big)                  # replace, not add
        m = jnp.max(masked, axis=1, keepdims=True)
        z = masked - m
        if use_bf16_exp:
            # v6e/v7x: bf16 EUP roughly doubles exp throughput; probs are bf16
            # MXU operands anyway.  Sum/reciprocal stay in f32.
            e = jnp.exp(z.astype(jnp.bfloat16))
            denom = jnp.sum(e.astype(jnp.float32), axis=1, keepdims=True)
            inv = pl.reciprocal(denom, approx=True)
            probs = e * inv.astype(jnp.bfloat16)                   # bf16
        else:
            # v5e: no bf16 EUP/VPU — keep the exp in f32.
            e = jnp.exp(z)
            inv = pl.reciprocal(jnp.sum(e, axis=1, keepdims=True), approx=True)
            probs = (e * inv).astype(jnp.bfloat16)
        f_h = f_s[:, pl.ds(h * c_head, c_head)]                    # (N, c_head) bf16
        out_acc[:, pl.ds(h * c_head, c_head)] = jnp.dot(
            probs, f_h, preferred_element_type=jnp.float32)        # (tile_i, c_head)

    # Single lane-dense output store for the whole (tile_i, H*c_head) tile.
    o_ref[0] = out_acc[...].astype(o_ref.dtype)


def _device_kind():
    try:
        return jax.devices()[0].device_kind.lower()
    except Exception:
        return ""


def _choose_tile_i(n, target):
    """Largest row tile <= target dividing N, preferring multiples of 32
    (int8 adjacency native sublane tile), then 16, then 8."""
    if n <= target:
        return n
    for step in (32, 16, 8):
        t = (target // step) * step
        while t >= step:
            if n % t == 0:
                return t
            t -= step
    return n   # fall back to a single full-row block (constraint waived)


def gat_layer(node_feats, adj_matrix, w_t, bias, a, *, num_heads, alpha=0.2,
              tile_i=None):
    """node_feats (B,N,C_in), adj (B,N,N) with 0/1 entries, w_t (C_in, H*c_head),
    bias (H*c_head,), a (H, 2*c_head).  concat_heads=True semantics."""
    B, N, c_in = node_feats.shape
    hc = w_t.shape[1]
    assert hc % num_heads == 0
    c_head = hc // num_heads

    kind = _device_kind()
    is_v5 = "v5" in kind
    big_vmem = ("v5" in kind) or ("v6" in kind)    # 128 MiB physical VMEM
    use_bf16_exp = not is_v5                        # no bf16 EUP/VPU on v5-gen

    if tile_i is None:
        tile_i = _choose_tile_i(N, target=512 if big_vmem else 256)
    assert N % tile_i == 0 and (tile_i % 8 == 0 or tile_i == N), (N, tile_i)
    n_row_tiles = N // tile_i

    a_l = a[:, :c_head]                          # (H, c_head)
    a_r = a[:, c_head:]                          # (H, c_head)
    eye_h = jnp.eye(num_heads, dtype=a.dtype)
    # al_blk[(h*c_head + c), g] = a_l[h, c] * delta(h, g)
    al_blk = (a_l[:, :, None] * eye_h[:, None, :]).reshape(hc, num_heads)
    # ar_rows[g, (h*c_head + c)] = delta(g, h) * a_r[h, c]  -> contract hc = (H, N)
    ar_rows = (eye_h[:, :, None] * a_r[None, :, :]).reshape(num_heads, hc)

    bias2 = bias.reshape(1, hc)
    # Fold the projection into the left-score matmul so per-tile left scores
    # come straight from x in f32:  left = x @ (W^T a_l) + (b . a_l).
    wal = w_t @ al_blk                           # (c_in, H)
    bal = bias2 @ al_blk                         # (1, H)

    # int8 adjacency: exact for 0/1 entries; the adjacency is the dominant
    # B*N^2 HBM stream, so this is 4x less traffic than f32 (2x less than bf16)
    # and halves the double-buffered adj tile in VMEM.
    adj_i8 = adj_matrix.astype(jnp.int8)

    # VMEM budget estimate (double-buffered pipeline blocks + scratch) used to
    # derive vmem_limit_bytes per generation (<=48 MiB on v7x's 64 MiB VMEM).
    est = (2 * tile_i * N * 1                    # adj tiles (int8, double-buffered)
           + 2 * N * c_in * 4                    # x block
           + 2 * tile_i * hc * 4                 # output block
           + N * hc * 2                          # f_s scratch (bf16 proj)
           + num_heads * max(N, 128) * 4         # right_s scratch
           + tile_i * hc * 4                     # out_acc scratch
           + 2 * (c_in * hc + hc + num_heads * hc
                  + c_in * num_heads + num_heads) * 4)   # parameter blocks
    cap = (100 << 20) if big_vmem else (48 << 20)
    vmem_limit = int(min(cap, max(32 << 20, 2 * est)))

    kernel = functools.partial(_gat_kernel, num_heads=num_heads, c_head=c_head,
                               alpha=alpha, tile_i=tile_i,
                               use_bf16_exp=use_bf16_exp)

    return pl.pallas_call(
        kernel,
        out_shape=jax.ShapeDtypeStruct((B, N, hc), node_feats.dtype),
        grid_spec=pltpu.PrefetchScalarGridSpec(
            num_scalar_prefetch=0,
            grid=(B, n_row_tiles),
            in_specs=[
                pl.BlockSpec((1, N, c_in), lambda b, i: (b, 0, 0)),     # x (reused across row tiles)
                pl.BlockSpec((1, tile_i, N), lambda b, i: (b, i, 0)),   # adj row tile (int8)
                pl.BlockSpec((c_in, hc), lambda b, i: (0, 0)),          # W^T
                pl.BlockSpec((1, hc), lambda b, i: (0, 0)),             # bias
                pl.BlockSpec((num_heads, hc), lambda b, i: (0, 0)),     # a_r block matrix
                pl.BlockSpec((c_in, num_heads), lambda b, i: (0, 0)),   # W^T a_l
                pl.BlockSpec((1, num_heads), lambda b, i: (0, 0)),      # bias . a_l
            ],
            out_specs=pl.BlockSpec((1, tile_i, hc), lambda b, i: (b, i, 0)),
            scratch_shapes=[
                pltpu.VMEM((N, hc), jnp.bfloat16),            # lane-dense bf16 proj (V)
                pltpu.VMEM((num_heads, N), jnp.float32),      # right scores (H, N)
                pltpu.VMEM((tile_i, hc), jnp.float32),        # output-tile assembly
            ]),
        compiler_params=pltpu.CompilerParams(
            # Batch axis feeds the two v7x TensorCores.  Row-tile axis must stay
            # "arbitrary": scratch filled at row_tile == 0 is reused, which
            # requires sequential row tiles per batch on a single core.
            # (With B == 1 on v7x one core idles; a per-core row-tile split with
            # duplicated projection would recover it — not done here.)
            dimension_semantics=("parallel", "arbitrary"),
            vmem_limit_bytes=vmem_limit),
    )(node_feats, adj_i8, w_t, bias2, ar_rows, wal, bal)


def gat_ref(node_feats, adj, w_t, bias, a, *, num_heads, alpha=0.2):
    """Pure-JAX f32 reference, mirrors the PyTorch forward (concat_heads=True)."""
    B, N, _ = node_feats.shape
    hc = w_t.shape[1]
    ch = hc // num_heads
    proj = node_feats @ w_t + bias                       # (B, N, H*ch)
    feats = proj.reshape(B, N, num_heads, ch)
    a_l, a_r = a[:, :ch], a[:, ch:]
    left = jnp.einsum('bnhc,hc->bnh', feats, a_l)
    right = jnp.einsum('bnhc,hc->bnh', feats, a_r)
    logits = left[:, :, None, :] + right[:, None, :, :]  # (B, i, j, h)
    logits = jnp.where(logits >= 0, logits, alpha * logits)
    masked = jnp.where(adj[..., None] == 1.0, logits, -9e15)
    probs = jax.nn.softmax(masked, axis=2)
    out = jnp.einsum('bijh,bjhc->bihc', probs, feats)
    return out.reshape(B, N, -1)


def _xavier_uniform(key, shape, gain):
    fan_out, fan_in = shape[0], shape[1]
    bound = gain * jnp.sqrt(6.0 / (fan_in + fan_out))
    return jax.random.uniform(key, shape, jnp.float32, -bound, bound)


if __name__ == "__main__":
    # Small, module-consistent shapes; N=64 with tile_i=32 exercises the
    # pl.when(row_tile == 0) scratch reuse and the int8-aligned row tiling.
    B, N, c_in, alpha = 2, 64, 8, 0.2

    key = jax.random.PRNGKey(0)
    k_x, k_adj, k_w, k_b, k_a, k_w2, k_b2, k_a2 = jax.random.split(key, 8)

    node_feats = jax.random.normal(k_x, (B, N, c_in), jnp.float32)
    adj = jax.random.bernoulli(k_adj, 0.4, (B, N, N)).astype(jnp.float32)
    adj = jnp.maximum(adj, jnp.eye(N, dtype=jnp.float32)[None])   # self-loops

    def make_params(kw, kb, ka, c_out, num_heads):
        c_head = c_out // num_heads
        # Deterministic parameter init (xavier_uniform, gain=1.414, like __init__).
        W = _xavier_uniform(kw, (num_heads * c_head, c_in), 1.414)   # (out, in)
        w_t = W.T                                                    # (in, out)
        lin_bound = 1.0 / jnp.sqrt(jnp.float32(c_in))
        bias = jax.random.uniform(kb, (num_heads * c_head,), jnp.float32,
                                  -lin_bound, lin_bound)
        a_param = _xavier_uniform(ka, (num_heads, 2 * c_head), 1.414)
        return w_t, bias, a_param

    # TODO(synk): concat_heads=False branch is unreachable in the PyTorch module
    # (__init__ only defines self.c_out when concat_heads=True), so only the
    # concat path is implemented.  print_attn_probs is a debug print and is not
    # translated.
    for (c_out, num_heads, kw, kb, ka) in [(16, 2, k_w, k_b, k_a),
                                           (32, 4, k_w2, k_b2, k_a2)]:
        w_t, bias, a_param = make_params(kw, kb, ka, c_out, num_heads)
        out = gat_layer(node_feats, adj, w_t, bias, a_param,
                        num_heads=num_heads, alpha=alpha, tile_i=32)
        out = jax.block_until_ready(out)

        ref = gat_ref(node_feats, adj, w_t, bias, a_param,
                      num_heads=num_heads, alpha=alpha)
        assert out.shape == (B, N, c_out)
        # probs@V uses bf16 MXU operands, exp may run in bf16 (v6e/v7x) and the
        # softmax denominator uses the approximate reciprocal, so compare at a
        # bf16-level tolerance against the pure-f32 reference.
        assert jnp.allclose(out, ref, atol=5e-2, rtol=5e-2), (
            f"mismatch vs reference (heads={num_heads})")

    print("KERNEL_OK")
</pallas_src>

<mosaic_0001>
module attributes {stable_mosaic.version = 11 : i64} {
  func.func @_gat_kernel(%arg0: i32, %arg1: i32, %arg2: memref<1x64x8xf32, #tpu.memory_space<vmem>>, %arg3: memref<1x32x64xi8, #tpu.memory_space<vmem>>, %arg4: memref<8x16xf32, #tpu.memory_space<vmem>>, %arg5: memref<1x16xf32, #tpu.memory_space<vmem>>, %arg6: memref<2x16xf32, #tpu.memory_space<vmem>>, %arg7: memref<8x2xf32, #tpu.memory_space<vmem>>, %arg8: memref<1x2xf32, #tpu.memory_space<vmem>>, %arg9: memref<1x32x16xf32, #tpu.memory_space<vmem>>, %arg10: memref<64x16xbf16, #tpu.memory_space<vmem>>, %arg11: memref<2x64xf32, #tpu.memory_space<vmem>>, %arg12: memref<32x16xf32, #tpu.memory_space<vmem>>) attributes {dimension_semantics = [#tpu.dimension_semantics<parallel>, #tpu.dimension_semantics<arbitrary>], iteration_bounds = array<i64: 2, 2>, scalar_prefetch = 0 : i64, scratch_operands = 3 : i64, tpu.core_type = #tpu.core_type<tc>, window_params = [{transform_indices = @transform_0, window_bounds = array<i64: 1, 64, 8>}, {transform_indices = @transform_1, window_bounds = array<i64: 1, 32, 64>}, {pipeline_mode = #tpu.pipeline_mode<synchronous>, transform_indices = @transform_2, window_bounds = array<i64: 8, 16>}, {pipeline_mode = #tpu.pipeline_mode<synchronous>, transform_indices = @transform_3, window_bounds = array<i64: 1, 16>}, {pipeline_mode = #tpu.pipeline_mode<synchronous>, transform_indices = @transform_4, window_bounds = array<i64: 2, 16>}, {pipeline_mode = #tpu.pipeline_mode<synchronous>, transform_indices = @transform_5, window_bounds = array<i64: 8, 2>}, {pipeline_mode = #tpu.pipeline_mode<synchronous>, transform_indices = @transform_6, window_bounds = array<i64: 1, 2>}, {transform_indices = @transform_7, window_bounds = array<i64: 1, 32, 16>}]} {
    %c0_i32 = arith.constant 0 : i32
    %0 = arith.cmpi eq, %arg1, %c0_i32 : i32
    %1 = arith.extui %0 : i1 to i32
    %c0_i32_0 = arith.constant 0 : i32
    %2 = arith.cmpi ne, %1, %c0_i32_0 : i32
    scf.if %2 {
      %c0_37 = arith.constant 0 : index
      %c0_38 = arith.constant 0 : index
      %c0_39 = arith.constant 0 : index
      %78 = vector.load %arg2[%c0_37, %c0_38, %c0_39] : memref<1x64x8xf32, #tpu.memory_space<vmem>>, vector<1x64x8xf32>
      %79 = vector.shape_cast %78 : vector<1x64x8xf32> to vector<64x8xf32>
      %c0_40 = arith.constant 0 : index
      %c0_41 = arith.constant 0 : index
      %80 = vector.load %arg4[%c0_40, %c0_41] : memref<8x16xf32, #tpu.memory_space<vmem>>, vector<8x16xf32>
      %cst_42 = arith.constant dense<0.000000e+00> : vector<64x16xf32>
      %81 = tpu.matmul %79, %80, %cst_42 {dimension_numbers = #tpu.dot_dimension_numbers<[1], [0], [0], [1], [0, 0, 1, 1], [], []>} : vector<64x8xf32>, vector<8x16xf32>, vector<64x16xf32> -> vector<64x16xf32>
      %c0_43 = arith.constant 0 : index
      %c0_44 = arith.constant 0 : index
      %82 = vector.load %arg5[%c0_43, %c0_44] : memref<1x16xf32, #tpu.memory_space<vmem>>, vector<1x16xf32>
      %83 = vector.broadcast %82 : vector<1x16xf32> to vector<64x16xf32>
      %84 = arith.addf %81, %83 : vector<64x16xf32>
      %c0_45 = arith.constant 0 : index
      %c0_46 = arith.constant 0 : index
      %85 = vector.load %arg6[%c0_45, %c0_46] : memref<2x16xf32, #tpu.memory_space<vmem>>, vector<2x16xf32>
      %cst_47 = arith.constant dense<0.000000e+00> : vector<2x64xf32>
      %86 = tpu.matmul %85, %84, %cst_47 {dimension_numbers = #tpu.dot_dimension_numbers<[1], [1], [0], [0], [0, 0, 1, 0], [], []>} : vector<2x16xf32>, vector<64x16xf32>, vector<2x64xf32> -> vector<2x64xf32>
      %c0_48 = arith.constant 0 : index
      %c0_49 = arith.constant 0 : index
      %87 = vector.load %arg11[%c0_48, %c0_49] : memref<2x64xf32, #tpu.memory_space<vmem>>, vector<2x64xf32>
      tpu.vector_store %arg11[%c0_48, %c0_49], %86 {strides = array<i32>} : memref<2x64xf32, #tpu.memory_space<vmem>>, vector<2x64xf32>,
      %88 = arith.truncf %84 : vector<64x16xf32> to vector<64x16xbf16>
      %c0_50 = arith.constant 0 : index
      %c0_51 = arith.constant 0 : index
      %89 = vector.load %arg10[%c0_50, %c0_51] : memref<64x16xbf16, #tpu.memory_space<vmem>>, vector<64x16xbf16>
      tpu.vector_store %arg10[%c0_50, %c0_51], %88 {strides = array<i32>} : memref<64x16xbf16, #tpu.memory_space<vmem>>, vector<64x16xbf16>,
    } else {
    }
    %c0 = arith.constant 0 : index
    %c0_1 = arith.constant 0 : index
    %c0_2 = arith.constant 0 : index
    %3 = vector.load %arg3[%c0, %c0_1, %c0_2] : memref<1x32x64xi8, #tpu.memory_space<vmem>>, vector<1x32x64xi8>
    %4 = vector.shape_cast %3 : vector<1x32x64xi8> to vector<32x64xi8>
    %5 = arith.sitofp %4 : vector<32x64xi8> to vector<32x64xf32>
    %cst = arith.constant 1.000000e+00 : f32
    %6 = vector.broadcast %cst : f32 to vector<32x64xf32>
    %7 = arith.cmpf oeq, %5, %6 : vector<32x64xf32>
    %c32_i32 = arith.constant 32 : i32
    %8 = arith.muli %arg1, %c32_i32 : i32
    %9 = tpu.assume_multiple %8, 32 : i32
    %c0_3 = arith.constant 0 : index
    %10 = arith.index_cast %9 : i32 to index
    %c0_4 = arith.constant 0 : index
    %11 = vector.load %arg2[%c0_3, %10, %c0_4] : memref<1x64x8xf32, #tpu.memory_space<vmem>>, vector<1x32x8xf32>
    %12 = vector.shape_cast %11 : vector<1x32x8xf32> to vector<32x8xf32>
    %c0_5 = arith.constant 0 : index
    %c0_6 = arith.constant 0 : index
    %13 = vector.load %arg7[%c0_5, %c0_6] : memref<8x2xf32, #tpu.memory_space<vmem>>, vector<8x2xf32>
    %cst_7 = arith.constant dense<0.000000e+00> : vector<32x2xf32>
    %14 = tpu.matmul %12, %13, %cst_7 {dimension_numbers = #tpu.dot_dimension_numbers<[1], [0], [0], [1], [0, 0, 1, 1], [], []>} : vector<32x8xf32>, vector<8x2xf32>, vector<32x2xf32> -> vector<32x2xf32>
    %c0_8 = arith.constant 0 : index
    %c0_9 = arith.constant 0 : index
    %15 = vector.load %arg8[%c0_8, %c0_9] : memref<1x2xf32, #tpu.memory_space<vmem>>, vector<1x2xf32>
    %16 = vector.broadcast %15 : vector<1x2xf32> to vector<32x2xf32>
    %17 = arith.addf %14, %16 : vector<32x2xf32>
    %18 = vector.extract_strided_slice %17 {offsets = [0, 0], sizes = [32, 1], strides = [1, 1]} : vector<32x2xf32> to vector<32x1xf32>
    %c0_10 = arith.constant 0 : index
    %c0_11 = arith.constant 0 : index
    %19 = vector.load %arg11[%c0_10, %c0_11] : memref<2x64xf32, #tpu.memory_space<vmem>>, vector<1x64xf32>
    %20 = vector.broadcast %18 : vector<32x1xf32> to vector<32x64xf32>
    %21 = vector.broadcast %19 : vector<1x64xf32> to vector<32x64xf32>
    %22 = arith.addf %20, %21 : vector<32x64xf32>
    %cst_12 = arith.constant 0.000000e+00 : f32
    %23 = vector.broadcast %cst_12 : f32 to vector<32x64xf32>
    %24 = arith.cmpf oge, %22, %23 : vector<32x64xf32>
    %cst_13 = arith.constant 2.000000e-01 : f32
    %25 = vector.broadcast %cst_13 : f32 to vector<32x64xf32>
    %26 = arith.mulf %25, %22 : vector<32x64xf32>
    %27 = arith.select %24, %22, %26 : vector<32x64xi1>, vector<32x64xf32>
    %cst_14 = arith.constant -9.000000e+15 : f32
    %28 = vector.broadcast %cst_14 : f32 to vector<32x64xf32>
    %29 = arith.select %7, %27, %28 : vector<32x64xi1>, vector<32x64xf32>
    %cst_15 = arith.constant dense<0xFF800000> : vector<32xf32>
    %30 = vector.multi_reduction <maximumf>, %29, %cst_15 [1] : vector<32x64xf32> to vector<32xf32>
    %31 = vector.shape_cast %30 : vector<32xf32> to vector<32x1xf32>
    %32 = vector.broadcast %31 : vector<32x1xf32> to vector<32x64xf32>
    %33 = arith.subf %29, %32 : vector<32x64xf32>
    %34 = arith.truncf %33 : vector<32x64xf32> to vector<32x64xbf16>
    %35 = math.exp %34 : vector<32x64xbf16>
    %36 = arith.extf %35 : vector<32x64xbf16> to vector<32x64xf32>
    %cst_16 = arith.constant dense<0.000000e+00> : vector<32xf32>
    %37 = vector.multi_reduction <add>, %36, %cst_16 [1] : vector<32x64xf32> to vector<32xf32>
    %38 = vector.shape_cast %37 : vector<32xf32> to vector<32x1xf32>
    %39 = tpu.reciprocal %38 {approx = true} : vector<32x1xf32> -> vector<32x1xf32>
    %40 = arith.truncf %39 : vector<32x1xf32> to vector<32x1xbf16>
    %41 = vector.broadcast %40 : vector<32x1xbf16> to vector<32x64xbf16>
    %42 = arith.mulf %35, %41 : vector<32x64xbf16>
    %c0_17 = arith.constant 0 : index
    %c0_18 = arith.constant 0 : index
    %43 = vector.load %arg10[%c0_17, %c0_18] : memref<64x16xbf16, #tpu.memory_space<vmem>>, vector<64x8xbf16>
    %cst_19 = arith.constant dense<0.000000e+00> : vector<32x8xf32>
    %44 = tpu.matmul %42, %43, %cst_19 {dimension_numbers = #tpu.dot_dimension_numbers<[1], [0], [0], [1], [0, 0, 1, 1], [], []>} : vector<32x64xbf16>, vector<64x8xbf16>, vector<32x8xf32> -> vector<32x8xf32>
    %c0_20 = arith.constant 0 : index
    %c0_21 = arith.constant 0 : index
    %45 = vector.load %arg12[%c0_20, %c0_21] : memref<32x16xf32, #tpu.memory_space<vmem>>, vector<32x8xf32>
    tpu.vector_store %arg12[%c0_20, %c0_21], %44 {strides = array<i32>} : memref<32x16xf32, #tpu.memory_space<vmem>>, vector<32x8xf32>,
    %46 = vector.extract_strided_slice %17 {offsets = [0, 1], sizes = [32, 1], strides = [1, 1]} : vector<32x2xf32> to vector<32x1xf32>
    %c1 = arith.constant 1 : index
    %c0_22 = arith.constant 0 : index
    %47 = vector.load %arg11[%c1, %c0_22] : memref<2x64xf32, #tpu.memory_space<vmem>>, vector<1x64xf32>
    %48 = vector.broadcast %46 : vector<32x1xf32> to vector<32x64xf32>
    %49 = vector.broadcast %47 : vector<1x64xf32> to vector<32x64xf32>
    %50 = arith.addf %48, %49 : vector<32x64xf32>
    %cst_23 = arith.constant 0.000000e+00 : f32
    %51 = vector.broadcast %cst_23 : f32 to vector<32x64xf32>
    %52 = arith.cmpf oge, %50, %51 : vector<32x64xf32>
    %cst_24 = arith.constant 2.000000e-01 : f32
    %53 = vector.broadcast %cst_24 : f32 to vector<32x64xf32>
    %54 = arith.mulf %53, %50 : vector<32x64xf32>
    %55 = arith.select %52, %50, %54 : vector<32x64xi1>, vector<32x64xf32>
    %cst_25 = arith.constant -9.000000e+15 : f32
    %56 = vector.broadcast %cst_25 : f32 to vector<32x64xf32>
    %57 = arith.select %7, %55, %56 : vector<32x64xi1>, vector<32x64xf32>
    %cst_26 = arith.constant dense<0xFF800000> : vector<32xf32>
    %58 = vector.multi_reduction <maximumf>, %57, %cst_26 [1] : vector<32x64xf32> to vector<32xf32>
    %59 = vector.shape_cast %58 : vector<32xf32> to vector<32x1xf32>
    %60 = vector.broadcast %59 : vector<32x1xf32> to vector<32x64xf32>
    %61 = arith.subf %57, %60 : vector<32x64xf32>
    %62 = arith.truncf %61 : vector<32x64xf32> to vector<32x64xbf16>
    %63 = math.exp %62 : vector<32x64xbf16>
    %64 = arith.extf %63 : vector<32x64xbf16> to vector<32x64xf32>
    %cst_27 = arith.constant dense<0.000000e+00> : vector<32xf32>
    %65 = vector.multi_reduction <add>, %64, %cst_27 [1] : vector<32x64xf32> to vector<32xf32>
    %66 = vector.shape_cast %65 : vector<32xf32> to vector<32x1xf32>
    %67 = tpu.reciprocal %66 {approx = true} : vector<32x1xf32> -> vector<32x1xf32>
    %68 = arith.truncf %67 : vector<32x1xf32> to vector<32x1xbf16>
    %69 = vector.broadcast %68 : vector<32x1xbf16> to vector<32x64xbf16>
    %70 = arith.mulf %63, %69 : vector<32x64xbf16>
    %c0_28 = arith.constant 0 : index
    %c8 = arith.constant 8 : index
    %71 = vector.load %arg10[%c0_28, %c8] : memref<64x16xbf16, #tpu.memory_space<vmem>>, vector<64x8xbf16>
    %cst_29 = arith.constant dense<0.000000e+00> : vector<32x8xf32>
    %72 = tpu.matmul %70, %71, %cst_29 {dimension_numbers = #tpu.dot_dimension_numbers<[1], [0], [0], [1], [0, 0, 1, 1], [], []>} : vector<32x64xbf16>, vector<64x8xbf16>, vector<32x8xf32> -> vector<32x8xf32>
    %c0_30 = arith.constant 0 : index
    %c8_31 = arith.constant 8 : index
    %73 = vector.load %arg12[%c0_30, %c8_31] : memref<32x16xf32, #tpu.memory_space<vmem>>, vector<32x8xf32>
    tpu.vector_store %arg12[%c0_30, %c8_31], %72 {strides = array<i32>} : memref<32x16xf32, #tpu.memory_space<vmem>>, vector<32x8xf32>,
    %c0_32 = arith.constant 0 : index
    %c0_33 = arith.constant 0 : index
    %74 = vector.load %arg12[%c0_32, %c0_33] : memref<32x16xf32, #tpu.memory_space<vmem>>, vector<32x16xf32>
    %c0_34 = arith.constant 0 : index
    %c0_35 = arith.constant 0 : index
    %c0_36 = arith.constant 0 : index
    %75 = vector.load %arg9[%c0_34, %c0_35, %c0_36] : memref<1x32x16xf32, #tpu.memory_space<vmem>>, vector<1x32x16xf32>
    %76 = vector.shape_cast %75 : vector<1x32x16xf32> to vector<32x16xf32>
    %77 = vector.shape_cast %74 : vector<32x16xf32> to vector<1x32x16xf32>
    tpu.vector_store %arg9[%c0_34, %c0_35, %c0_36], %77 {strides = array<i32>} : memref<1x32x16xf32, #tpu.memory_space<vmem>>, vector<1x32x16xf32>,
    return
  }
  func.func @transform_0(%arg0: i32, %arg1: i32) -> (i32, i32, i32) {
    %c0_i32 = arith.constant 0 : i32
    %c0_i32_0 = arith.constant 0 : i32
    %c0_i32_1 = arith.constant 0 : i32
    return %arg0, %c0_i32, %c0_i32_0 : i32, i32, i32
  }
  func.func @transform_1(%arg0: i32, %arg1: i32) -> (i32, i32, i32) {
    %c0_i32 = arith.constant 0 : i32
    %c0_i32_0 = arith.constant 0 : i32
    return %arg0, %arg1, %c0_i32 : i32, i32, i32
  }
  func.func @transform_2(%arg0: i32, %arg1: i32) -> (i32, i32) {
    %c0_i32 = arith.constant 0 : i32
    %c0_i32_0 = arith.constant 0 : i32
    %c0_i32_1 = arith.constant 0 : i32
    return %c0_i32, %c0_i32_0 : i32, i32
  }
  func.func @transform_3(%arg0: i32, %arg1: i32) -> (i32, i32) {
    %c0_i32 = arith.constant 0 : i32
    %c0_i32_0 = arith.constant 0 : i32
    %c0_i32_1 = arith.constant 0 : i32
    return %c0_i32, %c0_i32_0 : i32, i32
  }
  func.func @transform_4(%arg0: i32, %arg1: i32) -> (i32, i32) {
    %c0_i32 = arith.constant 0 : i32
    %c0_i32_0 = arith.constant 0 : i32
    %c0_i32_1 = arith.constant 0 : i32
    return %c0_i32, %c0_i32_0 : i32, i32
  }
  func.func @transform_5(%arg0: i32, %arg1: i32) -> (i32, i32) {
    %c0_i32 = arith.constant 0 : i32
    %c0_i32_0 = arith.constant 0 : i32
    %c0_i32_1 = arith.constant 0 : i32
    return %c0_i32, %c0_i32_0 : i32, i32
  }
  func.func @transform_6(%arg0: i32, %arg1: i32) -> (i32, i32) {
    %c0_i32 = arith.constant 0 : i32
    %c0_i32_0 = arith.constant 0 : i32
    %c0_i32_1 = arith.constant 0 : i32
    return %c0_i32, %c0_i32_0 : i32, i32
  }
  func.func @transform_7(%arg0: i32, %arg1: i32) -> (i32, i32, i32) {
    %c0_i32 = arith.constant 0 : i32
    %c0_i32_0 = arith.constant 0 : i32
    return %arg0, %arg1, %c0_i32 : i32, i32, i32
  }
}

</mosaic_0001>

<bundles_post_ra>
// kernel: tpu_custom_call.1
= control target key start
LH: loop header
LB: loop body
LE: loop exit
PB: predicated region body
PF: predicated region fallthrough
CT: control target
= control target key end

     0   :  { %s1498_s24 = smov 0   ;;  %s1500_s25 = smov 0   ;;  %s1687_s0 = inlined_call_operand.vmem [shape: f32[2,64,8], index: 0, kind: input, shape index: {}]   ;;  %s1688_s1 = inlined_call_operand.vmem [shape: s8[2,64,64], index: 1, kind: input, shape index: {}]   ;;  %s1689_s2 = inlined_call_operand.vmem [shape: f32[8,16], index: 2, kind: input, shape index: {}]   ;;  %s1690_s3 = inlined_call_operand.vmem [shape: f32[1,16], index: 3, kind: input, shape index: {}]   ;;  %s1691_s4 = inlined_call_operand.vmem [shape: f32[2,16], index: 4, kind: input, shape index: {}]   ;;  %s1692_s5 = inlined_call_operand.vmem [shape: f32[8,2], index: 5, kind: input, shape index: {}]   ;;  %s1693_s6 = inlined_call_operand.vmem [shape: f32[1,2], index: 6, kind: input, shape index: {}]   ;;  %s1694_s7 = inlined_call_operand.vmem [shape: f32[2,64,16], index: 7, kind: output, shape index: {}]  }
   0x1   :  { %s1502_s26 = smov 0   ;;  %s1504_s27 = smov 0  }
   0x2   :  { %s1506_s28 = smov 0  }
   0x3 LB: > { %s26_s29 = sadd.s32 1, %s1441_s26  ;;  %s29_s30 = sadd.s32 1, %s1445_s27  ;;  %s1449_s28 = sphi %s1506_s28, %s17_s28   ;;  %s1445_s27 = sphi %s1504_s27, %s1704_s27   ;;  %s1441_s26 = sphi %s1502_s26, %s1703_s26   ;;  %s1437_s25 = sphi %s1500_s25, %s1702_s25   ;;  %s1433_s24 = sphi %s1498_s24, %s1701_s24  }
   0x4   : > { %p27_p0 = scmp.ge.s32.totalorder %s26_s29, 2  ;;  %p1177_p1 = scmp.ge.s32.totalorder %s1449_s28, 1 }
   0x5   : > { %p266_p2 = scmp.lt.s32.totalorder %s1449_s28, 5 }
   0x6   : > { %s1706_s29 = smov (%p27_p0, %s26_s29), 0  ;;  %s1708_s30 = smov (!%p27_p0, %s29_s30), %s1445_s27 }
   0x7   : > { %1695 = sst [smem:[#allocation5_spill]] %s1706_s29  ;;  %p267_p3 = pnand %p1177_p1, %p266_p2 }
   0x8   : > { %p31_p4 = scmp.ge.s32.totalorder %s1708_s30, 2  ;;  %p310_p5 = scmp.lt.s32.totalorder (!%p267_p3), %s1437_s25, 1 }
   0x9   : > { %270 = sbr.rel (%p267_p3) target bundleno = 1509 (0x5e5), region = 48  ;;  %p317_p6 = scmp.lt.s32.totalorder (!%p267_p3), %s1433_s24, 1 }
   0xa   : > { %s1710_s30 = smov (%p31_p4, %s1708_s30), 0  ;;  %s1182_s8 = sshll.u32 (!%p267_p3), %s1433_s24, 2 }
   0xb   : > { %1696 = sst [smem:[#allocation6_spill]] %s1710_s30  ;;  %p326_p7 = scmp.lt.s32.totalorder (!%p267_p3), %s1182_s8, 7 }
   0xc   : > { %p1185_p8 = scmp.ne.s32.totalorder (!%p267_p3), %s1433_s24, 0 }
  0x10   : > { %s1712_s25 = smov (!%p310_p5, %s1437_s25), 1  ;;  %s1714_s8 = smov (!%p326_p7, %s1182_s8), 7 }
  0x11   : > { %s318_s9 = scalar_select %p317_p6, %s1433_s24, 1 }
  0x12   : > { %s1218_s10 = sshll.u32 %s1712_s25, 6  ;;  %s1180_s11 = sshll.u32 %s1712_s25, 1  ;;  %v346_v0 = vld [vmem:[%s1689_s2] sm:$0xff] (!%p1185_p8)  ;;  %vm354_vm0 = vcmask (!%p1185_p8), 64512   ;;  %v1451_v9 = vmov (!%p1185_p8), 0.0|0.0   ;;  %vm1452_vm1 = vmmov (!%p1185_p8), 0  }
  0x13   : > { %s1536_s14 = scalar_lea.vmem %s1687_s0, %s1218_s10  ;;  %s320_s15 = sadd.s32 %s1180_s11, %s318_s9  ;;  %1254 = vmatprep.subr.mxu0 (!%p1185_p8), %v346_v0  ;;  %1319 = vmatprep.subr.bf16.mxu1 (!%p1185_p8), %v1451_v9  ;;  %v1453_v10 = vmov (!%p1185_p8), 0.0   ;;  %v1186_v11 = vld [vmem:[%s1690_s3] ss:$0 sm:$0xff] (!%p1185_p8)  ;;  %vm485_vm2 = vcmask (!%p1185_p8), 130048   ;;  %vm583_vm4 = vcmask (!%p1185_p8), 517120  }
  0x14   : > { %s1181_s16 = sshll.u32 %s320_s15, 3  ;;  %s1183_s20 = sshll.u32 %s1712_s25, 3  ;;  %v338_v1 = vld [vmem:[%s1536_s14] sm:$0xff] (!%p1185_p8)  ;;  %v339_v2 = vld [vmem:[%s1536_s14 + $0x8] sm:$0xff] (!%p1185_p8)  ;;  %v340_v3 = vld [vmem:[%s1536_s14 + $0x10] sm:$0xff] (!%p1185_p8)  ;;  %1255 = vmatpush3.msra.mxu0 (!%p1185_p8), %v346_v0  ;;  %1284 = vmatprep.mubr.msk.f32.mxu1 (!%p1185_p8), %vm1452_vm1, %v1453_v10 }
  0x15   : > { %s1541_s19 = scalar_lea.vmem %s1688_s1, %s1181_s16  ;;  %s329_s21 = sadd.s32 %s1183_s20, %s1714_s8  ;;  %1256 = vmatprep.mubr.msk.f32.mxu0 (!%p1185_p8), %vm354_vm0, %v338_v1  ;;  %v341_v4 = vld [vmem:[%s1536_s14 + $0x18] sm:$0xff] (!%p1185_p8)  ;;  %v342_v5 = vld [vmem:[%s1536_s14 + $0x20] sm:$0xff] (!%p1185_p8)  ;;  %v343_v6 = vld [vmem:[%s1536_s14 + $0x28] sm:$0xff] (!%p1185_p8) }
  0x16   : > { %s1184_s22 = sshll.u32 %s329_s21, 3  ;;  %337 = sbr.rel (%p1185_p8) target bundleno = 483 (0x1e3), region = 52  ;;  %1257 = vmatmul.mubr.msk.f32.vlgmr.msra.gmra.mrb[0].mxu0 (!%p1185_p8), %vm354_vm0, %v339_v2  ;;  %v344_v7 = vld [vmem:[%s1536_s14 + $0x30] sm:$0xff] (!%p1185_p8)  ;;  %v345_v8 = vld [vmem:[%s1536_s14 + $0x38] sm:$0xff] (!%p1185_p8)  ;;  %vm1573_vm3 = vmpackc.low (!%p1185_p8), %vm485_vm2, %vm485_vm2 }
  0x17   : > { %s1546_s29 = scalar_lea.vmem %s1694_s7, %s1184_s22  ;;  %1259 = vmatprep.mubr.msk.f32.mxu0 (!%p1185_p8), %vm354_vm0, %v340_v3  ;;  %v484_v33 = vld [vmem:[%s1691_s4] sm:$0x3] (!%p1185_p8) }
  0x1a   : > { %1260 = vmatmul.mubr.msk.f32.gmra.mrb[2].mxu0 (!%p1185_p8), %vm354_vm0, %v341_v4 }
  0x1b   : > { %1262 = vmatprep.mubr.msk.f32.mxu0 (!%p1185_p8), %vm354_vm0, %v342_v5 }
  0x1e   : > { %1263 = vmatmul.mubr.msk.f32.gmra.mrb[4].mxu0 %vm354_vm0, %v343_v6 }
  0x1f   : > { %1265 = vmatprep.mubr.msk.f32.mxu0 %vm354_vm0, %v344_v7 }
  0x22   : > { %1266 = vmatmul.mubr.msk.f32.gmra.mrb[6].mxu0 %vm354_vm0, %v345_v8 }
  0xe9   : > { %v1258_v12 = vpop.f32.mrb[0].mxu0 }
  0xea   : > { %v451_v13 = vadd.f32 %v1258_v12, %v1186_v11  ;;  %v445_v14 = vpop.f32.mrb[1].mxu0 }
  0xeb   : > { %v446_v15 = vadd.f32 %v1186_v11, %v445_v14 }
  0xed   : > { %v1320_v17 = vpack.c.bf16 %v451_v13, %v446_v15  ;;  %v1261_v18 = vpop.f32.mrb[2].mxu0 }
  0xee   : > { %v461_v19 = vadd.f32 %v1261_v18, %v1186_v11  ;;  %v455_v20 = vpop.f32.mrb[3].mxu0 }
  0xef   : > { %589 = vst.msk [vmem:[#allocation2] sm:$0xff] %vm485_vm2, %v1320_v17  ;;  %1322 = vmatpush3.bf16.xpose.msk.msra.mxu1 %vm1573_vm3, %v1320_v17  ;;  %v456_v21 = vadd.f32 %v1186_v11, %v455_v20 }
  0xf0   : > { %1323 = vmatprep.subr.bf16.mxu1 %v1451_v9 }
  0xf1   : > { %v1324_v22 = vpack.c.bf16 %v461_v19, %v456_v21  ;;  %v1264_v23 = vpop.f32.mrb[4].mxu0 }
  0xf2   : > { %v471_v24 = vadd.f32 %v1264_v23, %v1186_v11  ;;  %v465_v25 = vpop.f32.mrb[5].mxu0 }
  0xf3   : > { %590 = vst.msk [vmem:[#allocation2 + $0x8] sm:$0xff] %vm485_vm2, %v1324_v22  ;;  %v466_v26 = vadd.f32 %v1186_v11, %v465_v25 }
  0xf5   : > { %v1328_v27 = vpack.c.bf16 %v471_v24, %v466_v26  ;;  %v1267_v28 = vpop.f32.mrb[6].mxu0 }
  0xf6   : > { %v481_v29 = vadd.f32 %v1267_v28, %v1186_v11  ;;  %v475_v30 = vpop.f32.mrb[7].mxu0 }
  0xf7   : > { %1326 = vmatpush3.bf16.xpose.msk.msra.mxu1 %vm1573_vm3, %v1324_v22  ;;  %591 = vst.msk [vmem:[#allocation2 + $0x10] sm:$0xff] %vm485_vm2, %v1328_v27  ;;  %v476_v31 = vadd.f32 %v1186_v11, %v475_v30 }
  0xf8   : > { %1327 = vmatprep.subr.bf16.mxu1 %v1451_v9 }
  0xf9   : > { %v1332_v32 = vpack.c.bf16 %v481_v29, %v476_v31 }
  0xfb   : > { %592 = vst.msk [vmem:[#allocation2 + $0x18] sm:$0xff] %vm485_vm2, %v1332_v32 }
  0xff   : > { %1330 = vmatpush3.bf16.xpose.msk.msra.mxu1 %vm1573_vm3, %v1328_v27 }
 0x100   : > { %1331 = vmatprep.subr.bf16.mxu1 %v1451_v9 }
 0x107   : > { %1334 = vmatpush3.bf16.xpose.msk.msra.mxu1 %vm1573_vm3, %v1332_v32 }
 0x10e   : > { %1285 = vmatmul.mubr.msk.f32.vlgmr.msra.gmra.mrb[0].mxu1 %vm485_vm2, %v484_v33 }
 0x1e1   : > { %v579_v34 = vpop.f32.mrb[0].mxu1 }
 0x1e2   : > { %584 = vst.msk [vmem:[#allocation3] sm:$0x3] %vm583_vm4, %v579_v34  ;;  %v1286_v35 = vpop.f32.mrb[1].mxu1 }
 0x1e3 PF: > { %v612_v36 = vld [vmem:[%s1692_s5] sm:$0xff]  ;;  %s1204_s15 = sshll.u32 %s1433_s24, 5  ;;  %vm620_vm5 = vcmask 64512   ;;  %v1454_v41 = vmov 1   ;;  %v1455_v51 = vmov 0   ;;  %v1609_v53 = vld [vmem:[#allocation2 + $0x8] sm:$0xff] }
 0x1e4   : > { %1287 = vmatprep.subr.mxu0 %v612_v36  ;;  %s607_s16 = scalar_lea.vmem %s1536_s14, %s1204_s15  ;;  %1382 = vset.pattern.permute.xlu0 %v1454_v41  ;;  %v1205_v42 = vld [vmem:[%s1693_s6] ss:$0 sm:$0xff]  ;;  %vm763_vm8 = vcmask 523264   ;;  %s1456_s14 = smov 120   ;;  %vm1055_vm3 = vcmask 130112   ;;  %vm1064_vm4 = vcmask 130048  }
 0x1e5   : > { %1288 = vmatpush3.msra.mxu0 %v612_v36  ;;  %v608_v37 = vld [vmem:[%s607_s16] sm:$0xff]  ;;  %v609_v38 = vld [vmem:[%s607_s16 + $0x8] sm:$0xff]  ;;  %v610_v39 = vld [vmem:[%s607_s16 + $0x10] sm:$0xff]  ;;  %1383 = vset.pattern.permute.xlu1 %v1454_v41  ;;  %s1457_s18 = smov 8  }
 0x1e6   : > { %1289 = vmatprep.mubr.msk.f32.mxu0 %vm620_vm5, %v608_v37  ;;  %v611_v40 = vld [vmem:[%s607_s16 + $0x18] sm:$0xff]  ;;  %v1605_v52 = vld [vmem:[#allocation2] sm:$0xff] }
 0x1e7   : > { %1290 = vmatmul.mubr.msk.f32.vlgmr.msra.gmra.mrb[0].mxu0 %vm620_vm5, %v609_v38  ;;  %1295 = vmatprep.subr.bf16.mxu1 %v1605_v52  ;;  %v593_v54 = vld [vmem:[%s1541_s19] sm:$0xff] }
 0x1e8   : > { %1292 = vmatprep.mubr.msk.f32.mxu0 %vm620_vm5, %v610_v39  ;;  %1296 = vmatpush3.bf16.msra.mxu1 %v1605_v52  ;;  %v594_v55 = vunpack.c.0.s8 %v593_v54  ;;  %v595_v57 = vunpack.c.1.s8 %v593_v54  ;;  %v596_v61 = vunpack.c.2.s8 %v593_v54  ;;  %v597_v63 = vunpack.c.3.s8 %v593_v54 }
 0x1e9   : > { %1297 = vmatprep.subr.bf16.mxu1 %v1609_v53  ;;  %v1213_v56 = vld [vmem:[#allocation3 + $0x1] ss:$0 sm:$0xff]  ;;  %v1210_v8 = vld [vmem:[#allocation3] ss:$0 sm:$0xff] }
 0x1ea   : > { %v598_v58 = vcvt.s32.f32 %v594_v55  ;;  %v599_v62 = vcvt.s32.f32 %v595_v57  ;;  %v600_v6 = vcvt.s32.f32 %v596_v61  ;;  %v601_v9 = vcvt.s32.f32 %v597_v63 }
 0x1eb   : > { %1293 = vmatmul.mubr.msk.f32.gmra.mrb[2].mxu0 %vm620_vm5, %v611_v40 }
 0x1ec   : > { %1298 = vmatpush3.bf16.msra.mxu1 %v1609_v53  ;;  %vm602_vm6 = vcmp.eq.f32.partialorder %v598_v58, 1.0  ;;  %vm603_vm9 = vcmp.eq.f32.partialorder %v599_v62, 1.0  ;;  %vm604_vm12 = vcmp.eq.f32.partialorder %v600_v6, 1.0  ;;  %vm605_vm13 = vcmp.eq.f32.partialorder %v601_v9, 1.0 }
 0x2ba   : > { %v1291_v43 = vpop.f32.mrb[0].mxu0 }
 0x2bb   : > { %v699_v44 = vpop.f32.mrb[1].mxu0  ;;  %v705_v48 = vadd.f32 %v1291_v43, %v1205_v42 }
 0x2bc   : > { %v700_v45 = vadd.f32 %v1205_v42, %v699_v44 }
 0x2be   : > { %v1294_v46 = vpop.f32.mrb[2].mxu0  ;;  %877 = vperm.xlu0 %1382, %v700_v45  }
 0x2bf   : > { %v709_v47 = vpop.f32.mrb[3].mxu0  ;;  %v715_v50 = vadd.f32 %v1294_v46, %v1205_v42 }
 0x2c0   : > { %v710_v49 = vadd.f32 %v1205_v42, %v709_v47 }
 0x2c2   : > { %885 = vperm.xlu1 %1383, %v710_v49   ;;  %881 = vperm.xlu0 %1382, %v705_v48  }
 0x2c6   : > { %889 = vperm.xlu1 %1383, %v715_v50   ;;  %1384 = vset.pattern.permute.xlu0 %v1455_v51 }
 0x2c7   : > { %721 = vperm.xlu0 %1384, %v700_v45  }
 0x2ca   : > { %1385 = vset.pattern.permute.xlu1 %v1455_v51 }
 0x2cb   : > { %726 = vperm.xlu1 %1385, %v705_v48   ;;  %736 = vperm.xlu0 %1384, %v715_v50   ;;  %v967_v50 = vld [vmem:[#allocation2 + $0x18] sm:$0xff] }
 0x2cf   : > { %731 = vperm.xlu1 %1385, %v710_v49   ;;  %1386 = vset.pattern.permute.xlu0 %v1454_v41  ;;  %v966_v49 = vld [vmem:[#allocation2 + $0x10] sm:$0xff] }
 0x2d0   : > { %1299 = vmatprep.subr.bf16.mxu1 %v966_v49 }
 0x2d1   : > { %1300 = vmatpush3.bf16.msra.mxu1 %v966_v49 }
 0x2d2   : > { %1301 = vmatprep.subr.bf16.mxu1 %v967_v50 }
 0x2d5   : > { %1302 = vmatpush3.bf16.msra.mxu1 %v967_v50 }
 0x33d   : > { %v878_v59 = vpop.permute.xlu0 %877 }
 0x33e   : > { %v896_v60 = vadd.f32 %v1213_v56, %v878_v59 }
 0x340   : > { %v904_v0 = vmul.f32 0.2, %v896_v60  ;;  %vm900_vm7 = vcmp.ge.f32.partialorder %v896_v60, 0.0 }
 0x341   : > { %v886_v1 = vpop.permute.xlu1 %885  ;;  %v882_v2 = vpop.permute.xlu0 %881 }
 0x342   : > { %v898_v3 = vadd.f32 %v1213_v56, %v886_v1  ;;  %v897_v4 = vadd.f32 %v1213_v56, %v882_v2  ;;  %v908_v5 = vsel %vm900_vm7, %v896_v60, %v904_v0 }
 0x343   : > { %v1615_v7 = vsel %vm602_vm6, %v908_v5, -9e+15 }
 0x344   : > { %v906_v10 = vmul.f32 0.2, %v898_v3  ;;  %v905_v11 = vmul.f32 0.2, %v897_v4  ;;  %v916_v12 = vsel %vm763_vm8, %v1615_v7, -inf  ;;  %vm901_vm10 = vcmp.ge.f32.partialorder %v897_v4, 0.0 }
 0x345   : > { %v890_v13 = vpop.permute.xlu1 %889  ;;  %917 = vmax.xlane.f32.xlu1 %v916_v12  ;;  %vm902_vm11 = vcmp.ge.f32.partialorder %v898_v3, 0.0 }
 0x346   : > { %v899_v14 = vadd.f32 %v1213_v56, %v890_v13  ;;  %v722_v15 = vpop.permute.xlu0 %721  ;;  %v909_v16 = vsel %vm901_vm10, %v897_v4, %v905_v11  ;;  %v910_v17 = vsel %vm902_vm11, %v898_v3, %v906_v10 }
 0x347   : > { %v743_v18 = vadd.f32 %v1210_v8, %v722_v15  ;;  %v913_v19 = vsel %vm603_vm9, %v909_v16, -9e+15  ;;  %v914_v23 = vsel %vm604_vm12, %v910_v17, -9e+15 }
 0x348   : > { %v907_v20 = vmul.f32 0.2, %v899_v14  ;;  %v919_v21 = vsel %vm763_vm8, %v913_v19, -inf  ;;  %vm903_vm14 = vcmp.ge.f32.partialorder %v899_v14, 0.0  ;;  %v922_v31 = vsel %vm763_vm8, %v914_v23, -inf }
 0x349   : > { %v751_v22 = vmul.f32 0.2, %v743_v18  ;;  %920 = vmax.xlane.f32.xlu0 %v919_v21  ;;  %vm747_vm15 = vcmp.ge.f32.partialorder %v743_v18, 0.0 }
 0x34a   : > { %v727_v24 = vpop.permute.xlu1 %726  ;;  %v737_v25 = vpop.permute.xlu0 %736  ;;  %v911_v26 = vsel %vm903_vm14, %v899_v14, %v907_v20 }
 0x34b   : > { %v744_v27 = vadd.f32 %v1210_v8, %v727_v24  ;;  %v746_v28 = vadd.f32 %v1210_v8, %v737_v25  ;;  %v915_v29 = vsel %vm605_vm13, %v911_v26, -9e+15  ;;  %v755_v30 = vsel %vm747_vm15, %v743_v18, %v751_v22 }
 0x34c   : > { %v925_v32 = vsel %vm763_vm8, %v915_v29, -inf  ;;  %v1626_v33 = vsel %vm602_vm6, %v755_v30, -9e+15 }
 0x34d   : > { %v752_v34 = vmul.f32 0.2, %v744_v27  ;;  %v754_v35 = vmul.f32 0.2, %v746_v28  ;;  %923 = vmax.xlane.f32.xlu0 %v922_v31  ;;  %926 = vmax.xlane.f32.xlu1 %v925_v32  ;;  %vm748_vm0 = vcmp.ge.f32.partialorder %v744_v27, 0.0  ;;  %vm750_vm1 = vcmp.ge.f32.partialorder %v746_v28, 0.0 }
 0x34e   : > { %v732_v36 = vpop.permute.xlu1 %731  ;;  %v764_v40 = vsel %vm763_vm8, %v1626_v33, -inf }
 0x34f   : > { %v745_v37 = vadd.f32 %v1210_v8, %v732_v36  ;;  %v756_v38 = vsel %vm748_vm0, %v744_v27, %v752_v34  ;;  %v758_v39 = vsel %vm750_vm1, %v746_v28, %v754_v35 }
 0x350   : > { %v1631_v41 = vsel %vm603_vm9, %v756_v38, -9e+15  ;;  %v1636_v44 = vsel %vm605_vm13, %v758_v39, -9e+15 }
 0x351   : > { %v753_v42 = vmul.f32 0.2, %v745_v37  ;;  %765 = vmax.xlane.f32.xlu0 %v764_v40  ;;  %v767_v43 = vsel %vm763_vm8, %v1631_v41, -inf  ;;  %vm749_vm2 = vcmp.ge.f32.partialorder %v745_v37, 0.0  ;;  %v773_v47 = vsel %vm763_vm8, %v1636_v44, -inf }
 0x352   : > { %768 = vmax.xlane.f32.xlu1 %v767_v43 }
 0x353   : > { %v757_v45 = vsel %vm749_vm2, %v745_v37, %v753_v42 }
 0x354   : > { %v761_v46 = vsel %vm604_vm12, %v757_v45, -9e+15 }
 0x355   : > { %v770_v48 = vsel %vm763_vm8, %v761_v46, -inf }
 0x356   : > { %774 = vmax.xlane.f32.xlu1 %v773_v47  ;;  %771 = vmax.xlane.f32.xlu0 %v770_v48 }
 0x367   : > { %974 = vrot.lane.b32.xlu1 %v1609_v53, %s1456_s14 }
 0x36c   : > { %972 = vrot.lane.b32.xlu0 %v1605_v52, %s1456_s14 }
 0x3d2   : > { %v918_v51 = vpop.xlane.xlu1 %917 }
 0x3d3   : > { %v928_v55 = vsub.f32 %v1615_v7, %v918_v51 }
 0x3d6   : > { %v921_v54 = vpop.xlane.xlu0 %920 }
 0x3d7   : > { %v929_v56 = vsub.f32 %v913_v19, %v921_v54 }
 0x3d9   : > { %v932_v57 = vpack.c.bf16 %v929_v56, %v928_v55 }
 0x3da   : > { %v924_v58 = vpop.xlane.xlu0 %923  ;;  %v927_v59 = vpop.xlane.xlu1 %926 }
 0x3db   : > { %v935_v60 = vmul.bf16 1069105081, %v932_v57  ;;  %v930_v61 = vsub.f32 %v914_v23, %v924_v58  ;;  %v931_v53 = vsub.f32 %v915_v29, %v927_v59 }
 0x3dd   : > { %1387 = vpow.bf16 %v935_v60  ;;  %v933_v62 = vpack.c.bf16 %v931_v53, %v930_v61 }
 0x3de   : > { %v766_v52 = vpop.xlane.xlu0 %765 }
 0x3df   : > { %v938_v63 = vmul.bf16 1069105081, %v933_v62  ;;  %v769_v0 = vpop.xlane.xlu1 %768  ;;  %v776_v15 = vsub.f32 %v1626_v33, %v766_v52 }
 0x3e0   : > { %v777_v16 = vsub.f32 %v1631_v41, %v769_v0 }
 0x3e1   : > { %1389 = vpow.bf16 %v938_v63 }
 0x3e2   : > { %v780_v17 = vpack.c.bf16 %v777_v16, %v776_v15 }
 0x3e3   : > { %v775_v1 = vpop.xlane.xlu1 %774  ;;  %v772_v2 = vpop.xlane.xlu0 %771 }
 0x3e4   : > { %v779_v18 = vsub.f32 %v1636_v44, %v775_v1  ;;  %v778_v19 = vsub.f32 %v761_v46, %v772_v2  ;;  %v783_v20 = vmul.bf16 1069105081, %v780_v17 }
 0x3e6   : > { %v781_v21 = vpack.c.bf16 %v779_v18, %v778_v19  ;;  %1391 = vpow.bf16 %v783_v20 }
 0x3e7   : > { %v973_v3 = vpop.permute.xlu0 %972  ;;  %v975_v4 = vpop.permute.xlu1 %974 }
 0x3e8   : > { %v1388_v5 = vpop.eup %1387  ;;  %1307 = vmatprep.subr.bf16.mxu0 %v973_v3  ;;  %v786_v22 = vmul.bf16 1069105081, %v781_v21 }
 0x3e9   : > { %v941_v6 = vunpack.c.h.bf16 %v1388_v5  ;;  %v940_v7 = vunpack.c.l.bf16 %v1388_v5  ;;  %1308 = vmatpush3.bf16.msra.mxu0 %v973_v3 }
 0x3ea   : > { %1309 = vmatprep.subr.bf16.mxu0 %v975_v4  ;;  %1393 = vpow.bf16 %v786_v22 }
 0x3eb   : > { %v947_v8 = vsel %vm763_vm8, %v941_v6, 0.0  ;;  %v944_v9 = vsel %vm763_vm8, %v940_v7, 0.0 }
 0x3ec   : > { %v1390_v10 = vpop.eup %1389  ;;  %948 = vadd.xlane.f32.xlu1 %v947_v8  ;;  %945 = vadd.xlane.f32.xlu0 %v944_v9 }
 0x3ed   : > { %v943_v11 = vunpack.c.h.bf16 %v1390_v10  ;;  %v942_v12 = vunpack.c.l.bf16 %v1390_v10  ;;  %1310 = vmatpush3.bf16.msra.mxu0 %v975_v4 }
 0x3ef   : > { %v953_v13 = vsel %vm763_vm8, %v943_v11, 0.0  ;;  %v950_v14 = vsel %vm763_vm8, %v942_v12, 0.0 }
 0x3f0   : > { %954 = vadd.xlane.f32.xlu1 %v953_v13  ;;  %951 = vadd.xlane.f32.xlu0 %v950_v14 }
 0x3f1   : > { %v1392_v23 = vpop.eup %1391 }
 0x3f2   : > { %v789_v24 = vunpack.c.h.bf16 %v1392_v23  ;;  %v788_v25 = vunpack.c.l.bf16 %v1392_v23 }
 0x3f4   : > { %v795_v27 = vsel %vm763_vm8, %v789_v24, 0.0  ;;  %v792_v28 = vsel %vm763_vm8, %v788_v25, 0.0 }
 0x3f5   : > { %v1394_v26 = vpop.eup %1393 }
 0x3f6   : > { %v791_v29 = vunpack.c.h.bf16 %v1394_v26  ;;  %v790_v30 = vunpack.c.l.bf16 %v1394_v26 }
 0x3f8   : > { %v801_v31 = vsel %vm763_vm8, %v791_v29, 0.0  ;;  %v798_v32 = vsel %vm763_vm8, %v790_v30, 0.0 }
 0x401   : > { %976 = vrot.lane.b32.xlu1 %v966_v49, %s1456_s14 }
 0x406   : > { %978 = vrot.lane.b32.xlu0 %v967_v50, %s1456_s14 }
 0x425   : > { %796 = vadd.xlane.f32.xlu0 %v795_v27  ;;  %793 = vadd.xlane.f32.xlu1 %v792_v28 }
 0x429   : > { %802 = vadd.xlane.f32.xlu1 %v801_v31  ;;  %799 = vadd.xlane.f32.xlu0 %v798_v32 }
 0x479   : > { %v949_v33 = vpop.xlane.xlu1 %948  ;;  %v946_v34 = vpop.xlane.xlu0 %945 }
 0x47a   : > { %1395 = vrcp.f32 %v949_v33 }
 0x47b   : > { %1397 = vrcp.f32 %v946_v34 }
 0x47d   : > { %v955_v35 = vpop.xlane.xlu1 %954  ;;  %v952_v36 = vpop.xlane.xlu0 %951 }
 0x47e   : > { %1399 = vrcp.f32 %v955_v35 }
 0x47f   : > { %1401 = vrcp.f32 %v952_v36 }
 0x481   : > { %v977_v37 = vpop.permute.xlu1 %976  ;;  %v979_v38 = vpop.permute.xlu0 %978 }
 0x482   : > { %1311 = vmatprep.subr.bf16.mxu0 %v977_v37 }
 0x483   : > { %1312 = vmatpush3.bf16.msra.mxu0 %v977_v37 }
 0x484   : > { %v1396_v39 = vpop.eup %1395  ;;  %1313 = vmatprep.subr.bf16.mxu0 %v979_v38 }
 0x485   : > { %v1398_v40 = vpop.eup %1397 }
 0x486   : > { %v960_v41 = vpack.c.bf16 %v1396_v39, %v1398_v40 }
 0x487   : > { %1314 = vmatpush3.bf16.msra.mxu0 %v979_v38 }
 0x488   : > { %v1400_v42 = vpop.eup %1399  ;;  %v962_v43 = vmul.bf16 %v1388_v5, %v960_v41 }
 0x489   : > { %v1402_v44 = vpop.eup %1401 }
 0x48a   : > { %v961_v45 = vpack.c.bf16 %v1400_v42, %v1402_v44  ;;  %1315 = vmatprep.mubr.msk.bf16.mxu0 %vm763_vm8, %v962_v43 }
 0x48c   : > { %v963_v46 = vmul.bf16 %v1390_v10, %v961_v45 }
 0x48e   : > { %1316 = vmatmul.mubr.msk.bf16.vlgmr.msra.gmra.mrb[4].mxu0 %vm763_vm8, %v963_v46 }
 0x4b2   : > { %v794_v47 = vpop.xlane.xlu1 %793  ;;  %v797_v48 = vpop.xlane.xlu0 %796 }
 0x4b3   : > { %1403 = vrcp.f32 %v794_v47 }
 0x4b4   : > { %1405 = vrcp.f32 %v797_v48 }
 0x4b6   : > { %v803_v49 = vpop.xlane.xlu1 %802  ;;  %v800_v50 = vpop.xlane.xlu0 %799 }
 0x4b7   : > { %1407 = vrcp.f32 %v803_v49 }
 0x4b8   : > { %1409 = vrcp.f32 %v800_v50 }
 0x4bd   : > { %v1404_v51 = vpop.eup %1403 }
 0x4be   : > { %v1406_v54 = vpop.eup %1405 }
 0x4bf   : > { %v808_v55 = vpack.c.bf16 %v1406_v54, %v1404_v51 }
 0x4c1   : > { %v1408_v56 = vpop.eup %1407  ;;  %v810_v57 = vmul.bf16 %v1392_v23, %v808_v55 }
 0x4c2   : > { %v1410_v58 = vpop.eup %1409 }
 0x4c3   : > { %1303 = vmatprep.mubr.msk.bf16.mxu1 %vm763_vm8, %v810_v57  ;;  %v809_v59 = vpack.c.bf16 %v1408_v56, %v1410_v58 }
 0x4c5   : > { %v811_v60 = vmul.bf16 %v1394_v26, %v809_v59 }
 0x4c7   : > { %1304 = vmatmul.mubr.msk.bf16.vlgmr.msra.gmra.mrb[0].mxu1 %vm763_vm8, %v811_v60 }
 0x561   : > { %v1317_v61 = vpop.f32.mrb[4].mxu0 }
 0x562   : > { %v1024_v53 = vpop.f32.mrb[5].mxu0 }
 0x563   : > { %1043 = vrot.lane.b32.xlu0 %v1024_v53, %s1457_s18  ;;  %v1318_v62 = vpop.f32.mrb[6].mxu0 }
 0x564   : > { %v1027_v52 = vpop.f32.mrb[7].mxu0 }
 0x565   : > { %1045 = vrot.lane.b32.xlu1 %v1027_v52, %s1457_s18 }
 0x567   : > { %1049 = vrot.lane.b32.xlu0 %v1318_v62, %s1457_s18 }
 0x569   : > { %1047 = vrot.lane.b32.xlu1 %v1317_v61, %s1457_s18 }
 0x59a   : > { %v1305_v63 = vpop.f32.mrb[0].mxu1 }
 0x59b   : > { %873 = vst.msk [vmem:[#allocation4 + $0x10] sm:$0xff] %vm620_vm5, %v1305_v63  ;;  %v856_v0 = vpop.f32.mrb[1].mxu1 }
 0x59c   : > { %871 = vst.msk [vmem:[#allocation4] sm:$0xff] %vm620_vm5, %v856_v0  ;;  %v1306_v1 = vpop.f32.mrb[2].mxu1 }
 0x59d   : > { %874 = vst.msk [vmem:[#allocation4 + $0x18] sm:$0xff] %vm620_vm5, %v1306_v1  ;;  %v859_v2 = vpop.f32.mrb[3].mxu1 }
 0x59e   : > { %872 = vst.msk [vmem:[#allocation4 + $0x8] sm:$0xff] %vm620_vm5, %v859_v2 }
 0x5d5   : > { %v1044_v3 = vpop.permute.xlu0 %1043 }
 0x5d6   : > { %1056 = vst.msk [vmem:[#allocation4] sm:$0xff] %vm1055_vm3, %v1044_v3 }
 0x5d7   : > { %v1046_v4 = vpop.permute.xlu1 %1045 }
 0x5d8   : > { %1057 = vst.msk [vmem:[#allocation4 + $0x8] sm:$0xff] %vm1055_vm3, %v1046_v4 }
 0x5d9   : > { %v1050_v5 = vpop.permute.xlu0 %1049 }
 0x5da   : > { %1059 = vst.msk [vmem:[#allocation4 + $0x18] sm:$0xff] %vm1055_vm3, %v1050_v5 }
 0x5db   : > { %v1048_v6 = vpop.permute.xlu1 %1047 }
 0x5dc   : > { %1058 = vst.msk [vmem:[#allocation4 + $0x10] sm:$0xff] %vm1055_vm3, %v1048_v6 }
 0x5dd   : > { %v1060_v7 = vld [vmem:[#allocation4] sm:$0xff] }
 0x5de   : > { %1065 = vst.msk [vmem:[%s1546_s29] sm:$0xff] %vm1064_vm4, %v1060_v7 }
 0x5df   : > { %v1061_v8 = vld [vmem:[#allocation4 + $0x8] sm:$0xff] }
 0x5e0   : > { %1066 = vst.msk [vmem:[%s1546_s29 + $0x8] sm:$0xff] %vm1064_vm4, %v1061_v8 }
 0x5e1   : > { %v1063_v9 = vld [vmem:[#allocation4 + $0x18] sm:$0xff] }
 0x5e2   : > { %1068 = vst.msk [vmem:[%s1546_s29 + $0x18] sm:$0xff] %vm1064_vm4, %v1063_v9 }
 0x5e3   : > { %v1062_v10 = vld [vmem:[#allocation4 + $0x10] sm:$0xff] }
 0x5e4   : > { %1067 = vst.msk [vmem:[%s1546_s29 + $0x10] sm:$0xff] %vm1064_vm4, %v1062_v10 }
 0x5e5 PF: > { %s17_s28 = sadd.s32 1, %s1449_s28   ;;  %s1699_s19 = sld [smem:[#allocation5_spill]] }
 0x5e6   : > { %p14_p9 = scmp.ge.s32.totalorder %s17_s28, 6   ;;  %s1700_s20 = sld [smem:[#allocation6_spill]] }
 0x5e7   : > { %s1701_s24 = smov %s1441_s26  ;;  %s1702_s25 = smov %s1445_s27 }
 0x5e8   :  { %16 = sbr.rel (!%p14_p9) target bundleno = 3 (0x3), region = 86 }
 0x5eb   : > { %s1703_s26 = smov %s1699_s19 }
 0x5ec   : > { %s1704_s27 = smov %s1700_s20 }

</bundles_post_ra>
